<compile_context>
chip_gen: v7x
topology: tpu7x:2x2x1
jax: 0.10.0
libtpu: 0.0.40
codegen_flags: <defaults>
</compile_context>

<pallas_src>
import jax
import jax.numpy as jnp
from jax.experimental import pallas as pl
from jax.experimental.pallas import tpu as pltpu


def _prediction_kernel(x_ref, w_ref, b_ref, o_ref):
    # x_ref: (1, C, T)   channels on sublanes, pixels on lanes (input dtype)
    # w_ref: (1, C, 1)   resident f32 weight (constant index_map)
    # b_ref: (1, 1)      f32 bias scalar in SMEM
    # o_ref: (1, 1, T)   lane-dense output block
    x = x_ref[...].astype(jnp.float32)          # in-kernel upcast (bf16 path)
    w = w_ref[...]                              # (1, C, 1) f32
    # VPU multiply (w broadcast over lanes) + XLU sublane reduce.
    z = jnp.sum(x * w, axis=1, keepdims=True) + b_ref[0, 0]   # (1, 1, T) f32
    # sigmoid(z) == 0.5 * tanh(0.5 * z) + 0.5  -> single EUP op per vreg.
    o_ref[...] = (0.5 * jnp.tanh(0.5 * z) + 0.5).astype(o_ref.dtype)


def _sublane_rows(c):
    return max(8, ((c + 7) // 8) * 8)


def _pick_tile_hw(hw, c, itemsize, per_buf_budget, batch):
    """Lane-tile size (multiple of 128, or full HW if tiny) such that one
    input block stays within `per_buf_budget` bytes, while keeping at least
    4 parallel (batch x hw-tile) blocks for megacore/2-TC sharding."""
    if hw <= 128:
        return hw                                       # full-dim block is legal
    hw_pad = ((hw + 127) // 128) * 128
    c_rows = _sublane_rows(c)
    max_lanes = (per_buf_budget // (c_rows * itemsize)) // 128 * 128
    # Large-C guard: never floor to 0; vmem_limit is computed from the actual
    # block bytes downstream so this stays compile-safe.
    max_lanes = max(128, max_lanes)
    tile = min(hw_pad, max_lanes)
    # Keep >= 4 parallel blocks so v7x's two TensorCores both get work.
    min_blocks = 4
    while tile > 128 and batch * pl.cdiv(hw, tile) < min_blocks:
        tile = max(128, ((tile // 2 + 127) // 128) * 128)
    return tile
    # TODO(synk): for extreme C (c_rows * 128-lane block > VMEM budget) add a
    # C-reduction grid axis ("arbitrary") with a pl.when accumulator.


def prediction_forward(feats, weight, bias):
    """feats: (B, C, H, W) in NCHW, any float dtype (f32 / bf16).
    weight: (C,) — Conv2d(in_channel, 1, 1) weight, squeezed from (1, C, 1, 1).
    bias:   () scalar.
    Returns (B, 1, H, W) in feats.dtype."""
    B, C, H, W = feats.shape
    HW = H * W
    x_dtype = feats.dtype
    itemsize = jnp.dtype(x_dtype).itemsize

    # Free row-major reshape — no transpose, no pad, no dtype conversion pass.
    x3d = feats.reshape(B, C, HW)
    w3d = weight.reshape(1, C, 1).astype(jnp.float32)
    b2d = bias.reshape(1, 1).astype(jnp.float32)

    # Per-generation VMEM budget (v5e/v6e: 128 MiB, v7x: 64 MiB per TC).
    try:
        info = pltpu.get_tpu_info()
        vmem_cap = int(getattr(info, "vmem_capacity_bytes", 64 * 1024 * 1024))
    except Exception:  # conservative fallback (v7x-sized)
        vmem_cap = 64 * 1024 * 1024
    per_buf_budget = min(vmem_cap // 8, 16 * 1024 * 1024)

    tile_hw = _pick_tile_hw(HW, C, itemsize, per_buf_budget, B)
    grid = (B, pl.cdiv(HW, tile_hw))

    # Explicit scoped-VMEM limit from the real footprint:
    #   2x double-buffered input + 2x output + lane-padded weight + headroom.
    c_rows = _sublane_rows(C)
    x_block_bytes = c_rows * tile_hw * itemsize
    o_block_bytes = 8 * tile_hw * itemsize          # (1,1,T) sublane-padded
    w_tile_bytes = c_rows * 128 * 4                 # lane-padded weight tile
    vmem_limit = 2 * x_block_bytes + 2 * o_block_bytes + w_tile_bytes + (2 << 20)
    vmem_limit = int(min(max(vmem_limit, 16 << 20), vmem_cap * 3 // 4))

    out = pl.pallas_call(
        _prediction_kernel,
        out_shape=jax.ShapeDtypeStruct((B, 1, HW), x_dtype),
        grid_spec=pltpu.PrefetchScalarGridSpec(
            num_scalar_prefetch=0,
            grid=grid,
            in_specs=[
                # x: channels on sublanes (== full C), pixels on lanes.
                pl.BlockSpec((1, C, tile_hw), lambda b, j: (b, 0, j)),
                # weight: resident across the whole grid.
                pl.BlockSpec((1, C, 1), lambda b, j: (0, 0, 0)),
                # bias: single scalar via SMEM (no padded VMEM tile / vld).
                pl.BlockSpec(memory_space=pltpu.MemorySpace.SMEM),
            ],
            out_specs=pl.BlockSpec((1, 1, tile_hw), lambda b, j: (b, 0, j)),
        ),
        compiler_params=pltpu.CompilerParams(
            # Both grid axes are independent -> shard across 2 TCs on v7x.
            dimension_semantics=("parallel", "parallel"),
            vmem_limit_bytes=vmem_limit,
        ),
    )(x3d, w3d, b2d)

    # Free reshape back to NCHW (B, 1, H, W).
    return out.reshape(B, 1, H, W)


if __name__ == "__main__":
    # Small, deterministic example consistent with the module's forward.
    B, C, H, W = 2, 4, 16, 16

    key = jax.random.PRNGKey(0)
    kx, kw, kb = jax.random.split(key, 3)

    feats = jax.random.normal(kx, (B, C, H, W), dtype=jnp.float32)
    # Conv2d(in_channel=C, out_channels=1, kernel_size=1) weight: (1, C, 1, 1).
    weight = jax.random.normal(kw, (C,), dtype=jnp.float32) * 0.1
    bias = jax.random.normal(kb, (), dtype=jnp.float32) * 0.1

    pred = prediction_forward(feats, weight, bias)
    pred = jax.block_until_ready(pred)

    # Reference in plain JAX (1x1 conv == channel reduction) to sanity-check.
    ref = jax.nn.sigmoid(
        jnp.einsum("bchw,c->bhw", feats, weight)[:, None, :, :] + bias
    )
    assert pred.shape == (B, 1, H, W)
    assert jnp.allclose(pred, ref, atol=1e-5, rtol=1e-5)

    print("KERNEL_OK")
</pallas_src>

<mosaic_0001>
module attributes {stable_mosaic.version = 11 : i64} {
  func.func @_prediction_kernel(%arg0: i32, %arg1: i32, %arg2: memref<1x4x128xf32, #tpu.memory_space<vmem>>, %arg3: memref<1x4x1xf32, #tpu.memory_space<vmem>>, %arg4: memref<1x1xf32, #tpu.memory_space<smem>>, %arg5: memref<1x1x128xf32, #tpu.memory_space<vmem>>) attributes {dimension_semantics = [#tpu.dimension_semantics<parallel>, #tpu.dimension_semantics<parallel>], iteration_bounds = array<i64: 2, 2>, scalar_prefetch = 0 : i64, scratch_operands = 0 : i64, tpu.core_type = #tpu.core_type<tc>, window_params = [{transform_indices = @transform_0, window_bounds = array<i64: 1, 4, 128>}, {pipeline_mode = #tpu.pipeline_mode<synchronous>, transform_indices = @transform_1, window_bounds = array<i64: 1, 4, 1>}, {transform_indices = @transform_2, window_bounds = array<i64: 1, 1>}, {transform_indices = @transform_3, window_bounds = array<i64: 1, 1, 128>}]} {
    %c0 = arith.constant 0 : index
    %c0_0 = arith.constant 0 : index
    %c0_1 = arith.constant 0 : index
    %0 = vector.load %arg2[%c0, %c0_0, %c0_1] : memref<1x4x128xf32, #tpu.memory_space<vmem>>, vector<1x4x128xf32>
    %c0_2 = arith.constant 0 : index
    %c0_3 = arith.constant 0 : index
    %c0_4 = arith.constant 0 : index
    %1 = vector.load %arg3[%c0_2, %c0_3, %c0_4] : memref<1x4x1xf32, #tpu.memory_space<vmem>>, vector<1x4x1xf32>
    %2 = vector.broadcast %1 : vector<1x4x1xf32> to vector<1x4x128xf32>
    %3 = arith.mulf %0, %2 : vector<1x4x128xf32>
    %cst = arith.constant dense<0.000000e+00> : vector<1x128xf32>
    %4 = vector.multi_reduction <add>, %3, %cst [1] : vector<1x4x128xf32> to vector<1x128xf32>
    %5 = vector.shape_cast %4 : vector<1x128xf32> to vector<1x1x128xf32>
    %c0_5 = arith.constant 0 : index
    %c0_6 = arith.constant 0 : index
    %6 = memref.load %arg4[%c0_5, %c0_6] : memref<1x1xf32, #tpu.memory_space<smem>>
    %7 = vector.broadcast %6 : f32 to vector<1x1x128xf32>
    %8 = arith.addf %5, %7 : vector<1x1x128xf32>
    %cst_7 = arith.constant 5.000000e-01 : f32
    %9 = vector.broadcast %cst_7 : f32 to vector<1x1x128xf32>
    %10 = arith.mulf %9, %8 : vector<1x1x128xf32>
    %11 = math.tanh %10 : vector<1x1x128xf32>
    %cst_8 = arith.constant 5.000000e-01 : f32
    %12 = vector.broadcast %cst_8 : f32 to vector<1x1x128xf32>
    %13 = arith.mulf %12, %11 : vector<1x1x128xf32>
    %cst_9 = arith.constant 5.000000e-01 : f32
    %14 = vector.broadcast %cst_9 : f32 to vector<1x1x128xf32>
    %15 = arith.addf %13, %14 : vector<1x1x128xf32>
    %c0_10 = arith.constant 0 : index
    %c0_11 = arith.constant 0 : index
    %c0_12 = arith.constant 0 : index
    %16 = vector.load %arg5[%c0_10, %c0_11, %c0_12] : memref<1x1x128xf32, #tpu.memory_space<vmem>>, vector<1x1x128xf32>
    tpu.vector_store %arg5[%c0_10, %c0_11, %c0_12], %15 {strides = array<i32>} : memref<1x1x128xf32, #tpu.memory_space<vmem>>, vector<1x1x128xf32>,
    return
  }
  func.func @transform_0(%arg0: i32, %arg1: i32) -> (i32, i32, i32) {
    %c0_i32 = arith.constant 0 : i32
    %c0_i32_0 = arith.constant 0 : i32
    return %arg0, %c0_i32, %arg1 : i32, i32, i32
  }
  func.func @transform_1(%arg0: i32, %arg1: i32) -> (i32, i32, i32) {
    %c0_i32 = arith.constant 0 : i32
    %c0_i32_0 = arith.constant 0 : i32
    %c0_i32_1 = arith.constant 0 : i32
    %c0_i32_2 = arith.constant 0 : i32
    return %c0_i32, %c0_i32_0, %c0_i32_1 : i32, i32, i32
  }
  func.func @transform_2(%arg0: i32, %arg1: i32) -> (i32, i32) {
    %c0_i32 = arith.constant 0 : i32
    %c0_i32_0 = arith.constant 0 : i32
    %c0_i32_1 = arith.constant 0 : i32
    return %c0_i32, %c0_i32_0 : i32, i32
  }
  func.func @transform_3(%arg0: i32, %arg1: i32) -> (i32, i32, i32) {
    %c0_i32 = arith.constant 0 : i32
    %c0_i32_0 = arith.constant 0 : i32
    return %arg0, %c0_i32, %arg1 : i32, i32, i32
  }
}

</mosaic_0001>

<bundles_post_ra>
// kernel: tpu_custom_call.1
= control target key start
LH: loop header
LB: loop body
LE: loop exit
PB: predicated region body
PF: predicated region fallthrough
CT: control target
= control target key end

     0   :  { %s773_s0 = inlined_call_operand.hbm [shape: f32[2,4,256], index: 0, kind: input, shape index: {}]   ;;  %s774_s1 = inlined_call_operand.vmem [shape: f32[1,4,1], index: 1, kind: input, shape index: {}]   ;;  %s775_s2 = inlined_call_operand.<no memory space> [shape: f32[1,1], index: 2, kind: input, shape index: {}]   ;;  %s776_s3 = inlined_call_operand.hbm [shape: f32[2,1,256], index: 3, kind: output, shape index: {}]  }
   0x1   :  { %8 = sst [smem:[#allocation2]] %s775_s2 }
   0x2   :  { %9 = vsyncpa [#allocation4], 0 }
   0x3   :  { %11 = vsyncpa [#allocation4 + $0x1], 0 }
   0x4   :  { %12 = vsyncpa [#allocation5], 0 }
   0x5   :  { %14 = vsyncpa [#allocation5 + $0x1], 0  ;;  %s575_s14 = smov 0   ;;  %s577_s15 = smov 0  }
   0x6   :  { %s579_s16 = smov 0   ;;  %s581_s17 = smov 0  }
   0x7   :  { %s583_s18 = smov 0   ;;  %s585_s19 = smov 0  }
   0x8   :  { %s587_s20 = smov 0   ;;  %s589_s21 = smov 0  }
   0x9 LB: > { %s324_s2 = sadd.s32 4294967295, %s547_s21   ;;  %s325_s22 = sadd.s32 4294967294, %s547_s21   ;;  %s547_s21 = sphi %s589_s21, %s20_s21   ;;  %s543_s20 = sphi %s587_s20, %s793_s20   ;;  %s539_s19 = sphi %s585_s19, %s792_s19   ;;  %s535_s18 = sphi %s583_s18, %s791_s18   ;;  %s531_s17 = sphi %s581_s17, %s790_s17   ;;  %s527_s16 = sphi %s579_s16, %s789_s16   ;;  %s523_s15 = sphi %s577_s15, %s788_s15   ;;  %s519_s14 = sphi %s575_s14, %s787_s14  }
   0xa   : > { %s29_s23 = sadd.s32 1, %s539_s19  ;;  %s32_s24 = sadd.s32 1, %s543_s20 }
   0xb   : > { %p30_p0 = scmp.ge.s32.totalorder %s29_s23, 2  ;;  %s41_s25 = sadd.s32 1, %s527_s16 }
   0xc   : > { %p48_p1 = scmp.ne.s32.totalorder %s527_s16, %s523_s15  ;;  %p49_p2 = scmp.eq.s32.totalorder %s547_s21, 0 }
   0xd   : > { %s795_s23 = smov (%p30_p0, %s29_s23), 0  ;;  %s797_s24 = smov (!%p30_p0, %s32_s24), %s543_s20 }
   0xe   : > { %s37_s26 = ssub.s32 %s539_s19, %s795_s23  ;;  %p628_p3 = por %p49_p2, %p48_p1 }
   0xf   : > { %p34_p4 = scmp.ge.s32.totalorder %s797_s24, 2  ;;  %p54_p5 = scmp.ne.s32.totalorder %s523_s15, %s519_s14 }
  0x10   : > { %p55_p6 = scmp.eq.s32.totalorder %s324_s2, 0  ;;  %p122_p7 = scmp.eq.s32.totalorder %s324_s2, 3 }
  0x11   : > { %s799_s24 = smov (%p34_p4, %s797_s24), 0  ;;  %p128_p10 = scmp.eq.s32.totalorder %s325_s22, 3 }
  0x12   : > { %p636_p8 = por %p55_p6, %p54_p5  ;;  %p640_p9 = por %p122_p7, %p48_p1 }
  0x13   : > { %s36_s30 = ssub.s32 %s543_s20, %s799_s24  ;;  %p646_p12 = por %p128_p10, %p54_p5 }
  0x14   : > { %s780_s29 = scalar_select %p640_p9, 1, 0 }
  0x15   : > { %s38_s4 = sor.u32 %s37_s26, %s36_s30  ;;  %p349_p13 = scmp.lt.s32.totalorder %s547_s21, 4 }
  0x16   : > { %p39_p11 = scmp.eq.s32.totalorder %s38_s4, 0  ;;  %s154_s6 = sand.u32 1, %s527_s16  }
  0x17   : > { %s781_s5 = scalar_select %p646_p12, 1, 0 }
  0x18   : > { %s653_s7 = scalar_select %p39_p11, %s527_s16, %s41_s25  }
  0x19   : > { %s328_s8 = sshll.u32 %s154_s6, 2  ;;  %s329_s9 = sshll.u32 %s543_s20, 1 }
  0x1a   : > { %s163_s10 = sadd.s32 %s539_s19, %s329_s9  ;;  %s158_s11 = scalar_lea.vmem [#allocation3], %s328_s8 }
  0x1b   : > { %s167_s12 = sshll.u32 %s158_s11, 4  ;;  %s330_s13 = sshll.u32 %s163_s10, 6  ;;  %s657_s12 = int_to_ptr.vmem [resolvable:$true] %s167_s12 }
  0x1c   : > { %s662_s26 = scalar_lea.hbm %s773_s0, %s330_s13  ;;  %p666_p0 = pnand %p349_p13, %p628_p3 }
  0x1d   : > { %s155_s30 = scalar_lea.sflag [#allocation4], %s154_s6  ;;  %s419_s4 = scalar_lea.hbm %s662_s26, 64 }
  0x1e   : > { %p420_p4 = scmp.ne.s32.totalorder %s662_s26, %s419_s4  ;;  %p421_p5 = pneg %p666_p0 }
  0x1f   : > { %s424_s9 = scalar_lea.hbm %s773_s0, 256  ;;  %p425_p3 = scmp.lt.u32.totalorder %s662_s26, %s773_s0 }
  0x20   : > { %p422_p6 = pnand %p421_p5, %p420_p4  ;;  %p426_p10 = scmp.lt.u32.totalorder %s424_s9, %s419_s4 }
  0x21   : > { %p428_p13 = scmp.lt.u32.totalorder %s419_s4, %s662_s26 }
  0x22   : > { %p423_p7 = pneg %p422_p6  ;;  %p427_p11 = por %p426_p10, %p425_p3 }
  0x24   : > { %p429_p1 = por %p428_p13, %p427_p11 }
  0x26   : > { %p430_p2 = pnand %p429_p1, %p423_p7 }
  0x28   : > { %433 = shalt.err (!%p430_p2)
}
  0x29   : > { %s434_s6 = scalar_lea.vmem %s657_s12, 64  ;;  %s549_s13 = smov [#allocation3]  }
  0x2a   : > { %p435_p4 = scmp.ne.s32.totalorder %s657_s12, %s434_s6  ;;  %s439_s2 = sshll.u32 %s549_s13, 4  ;;  %s440_s2 = int_to_ptr.vmem [resolvable:$false] %s439_s2 }
  0x2b   : > { %s441_s22 = scalar_lea.vmem %s440_s2, 128  ;;  %p442_p9 = scmp.lt.s32.totalorder %s657_s12, %s440_s2 }
  0x2c   : > { %p437_p6 = pnand %p435_p4, %p421_p5  ;;  %p443_p3 = scmp.lt.s32.totalorder %s441_s22, %s434_s6 }
  0x2e   : > { %p438_p12 = pneg %p437_p6  ;;  %p444_p10 = por %p443_p3, %p442_p9 }
  0x30   : > { %p445_p11 = pnand %p444_p10, %p438_p12 }
  0x32   : > { %448 = shalt.err (!%p445_p11)
}
  0x33   : > { %344 = dma.hbm_to_vmem [thread:$0]  (!%p666_p0), %s662_s26, 64, %s657_s12, %s155_s30  }
  0x34   : > { %p783_p1 = scmp.lt.s32.totalorder %s547_s21, 5  ;;  %p784_p2 = scmp.ge.s32.totalorder %s547_s21, 1 }
  0x36   : > { %p173_p5 = pnand %p784_p2, %p783_p1 }
  0x37   : > { %s702_s4 = sand.u32 (!%p173_p5), 1, %s523_s15  }
  0x38   : > { %176 = sbr.rel (%p173_p5) target bundleno = 242 (0xf2), region = 32  ;;  %s332_s27 = sshll.u32 (!%p173_p5), %s702_s4, 2 }
  0x39   : > { %s179_s8 = scalar_lea.sflag (!%p173_p5), [#allocation4], %s702_s4  ;;  %s182_s9 = scalar_lea.vmem (!%p173_p5), [#allocation3], %s332_s27 }
  0x3f   : > { %510 = dma.done.wait (%p636_p8), %s179_s8, 64  }
  0x40   : > { %512 = vsyncadd (%p636_p8), %s179_s8, 4294967232  ;;  %v550_v0 = vmov 0   ;;  %v205_v1 = vld [vmem:[%s774_s1] sm:$0xf]  ;;  %vm212_vm0 = vcmask 1043456   ;;  %s220_s25 = sld [smem:[#allocation2]] }
  0x41   : > { %416 = vset.pattern.permute.xlu0 %v550_v0  ;;  %v204_v2 = vld [vmem:[%s182_s9] sm:$0xf]  ;;  %s333_s28 = sshll.u32 %s535_s18, 1  ;;  %s203_s11 = scalar_lea.vmem [#allocation6], %s702_s4 }
  0x42   : > { %208 = vperm.xlu0 %416, %v205_v1   ;;  %s239_s30 = sadd.s32 %s531_s17, %s333_s28  ;;  %s243_s6 = sshll.u32 %s203_s11, 4  ;;  %s721_s6 = int_to_ptr.vmem [resolvable:$true] %s243_s6 }
  0x43   : > { %s334_s10 = sshll.u32 %s239_s30, 4  ;;  %s229_s27 = scalar_lea.sflag [#allocation5], %s702_s4 }
  0x44   : > { %s719_s22 = scalar_lea.hbm %s776_s3, %s334_s10  ;;  %s449_s18 = scalar_lea.vmem %s721_s6, 16 }
  0x45   : > { %p450_p8 = scmp.ne.s32.totalorder %s721_s6, %s449_s18  ;;  %p785_p9 = scmp.ne.s32.totalorder %s780_s29, 0 }
  0x46   : > { %v221_v11 = vstv %s220_s25  ;;  %s551_s17 = smov [#allocation6]  }
  0x47   : > { %p451_p12 = pnand %p450_p8, %p785_p9  ;;  %s453_s8 = sshll.u32 %s551_s17, 4  ;;  %s454_s8 = int_to_ptr.vmem [resolvable:$false] %s453_s8 }
  0x48   : > { %s455_s9 = scalar_lea.vmem %s454_s8, 32  ;;  %p456_p7 = scmp.lt.s32.totalorder %s721_s6, %s454_s8 }
  0x49   : > { %p452_p0 = pneg %p451_p12  ;;  %p457_p13 = scmp.lt.s32.totalorder %s455_s9, %s449_s18 }
  0x4b   : > { %p458_p4 = por %p457_p13, %p456_p7 }
  0x4d   : > { %p459_p6 = pnand %p458_p4, %p452_p0 }
  0xc1   : > { %v209_v3 = vpop.permute.xlu0 %208 }
  0xc2   : > { %v211_v4 = vmul.f32 %v209_v3, %v204_v2 }
  0xc4   : > { %v213_v5 = vsel %vm212_vm0, %v211_v4, 0.0 }
  0xc5   : > { %v214_v6 = vrot.slane %v213_v5, 4 }
  0xc7   : > { %v215_v7 = vadd.f32 %v214_v6, %v213_v5 }
  0xc9   : > { %v216_v8 = vrot.slane %v215_v7, 2 }
  0xcb   : > { %v217_v9 = vadd.f32 %v216_v8, %v215_v7 }
  0xcd   : > { %v218_v10 = vrot.slane %v217_v9, 1 }
  0xcf   : > { %v219_v12 = vadd.f32 %v218_v10, %v217_v9 }
  0xd1   : > { %v222_v13 = vadd.f32 %v221_v11, %v219_v12 }
  0xd3   : > { %v223_v14 = vmul.f32 0.5, %v222_v13 }
  0xd5   : > { %417 = vtanh.f32 %v223_v14 }
  0xdf   : > { %v418_v15 = vpop.eup %417 }
  0xe0   : > { %v225_v16 = vmul.f32 0.5, %v418_v15 }
  0xe2   : > { %v226_v17 = vadd.f32 0.5, %v225_v16 }
  0xe4   : > { %227 = vst [vmem:[%s203_s11] sm:$0x1] %v226_v17 }
  0xe5   : > { %462 = shalt.err (!%p459_p6)
}
  0xe6   : > { %s463_s4 = scalar_lea.hbm %s719_s22, 16  ;;  %s467_s25 = scalar_lea.hbm %s776_s3, 64 }
  0xe7   : > { %p464_p3 = scmp.ne.s32.totalorder %s719_s22, %s463_s4  ;;  %p468_p1 = scmp.lt.u32.totalorder %s719_s22, %s776_s3 }
  0xe8   : > { %p469_p2 = scmp.lt.u32.totalorder %s467_s25, %s463_s4  ;;  %p471_p8 = scmp.lt.u32.totalorder %s463_s4, %s719_s22 }
  0xe9   : > { %p465_p10 = pnand %p464_p3, %p785_p9 }
  0xea   : > { %p470_p5 = por %p469_p2, %p468_p1 }
  0xeb   : > { %p466_p11 = pneg %p465_p10 }
  0xec   : > { %p472_p12 = por %p471_p8, %p470_p5 }
  0xee   : > { %p473_p0 = pnand %p472_p12, %p466_p11 }
  0xf0   : > { %476 = shalt.err (!%p473_p0)
}
  0xf1   : > { %339 = dma.vmem_to_hbm [thread:$0]  (%p785_p9), %s721_s6, 16, %s719_s22, %s229_s27  }
  0xf2 PF: > { %p350_p7 = scmp.ge.s32.totalorder %s547_s21, 2  ;;  %s255_s10 = sand.u32 1, %s519_s14  }
  0xf3   : > { %p786_p13 = scmp.ne.s32.totalorder %s781_s5, 0  ;;  %s256_s11 = scalar_lea.sflag [#allocation5], %s255_s10 }
  0xf5   : > { %p346_p4 = pnand %p350_p7, %p786_p13 }
  0xf7   : > { %514 = dma.done.wait (!%p346_p4), %s256_s11, 16  }
  0xf8   : > { %516 = vsyncadd (!%p346_p4), %s256_s11, 4294967280  ;;  %s20_s21 = sadd.s32 1, %s547_s21   ;;  %s787_s14 = smov %s523_s15 }
  0xf9   : > { %p17_p6 = scmp.ge.s32.totalorder %s20_s21, 6   ;;  %s788_s15 = smov %s527_s16 }
  0xfa   : > { %s789_s16 = smov %s653_s7  ;;  %s790_s17 = smov %s539_s19 }
  0xfb   : > { %s791_s18 = smov %s543_s20  ;;  %s792_s19 = smov %s795_s23 }
  0xfc   : > { %s793_s20 = smov %s799_s24  ;;  %19 = sbr.rel (!%p17_p6) target bundleno = 9 (0x9), region = 77 }
 0x103   :  { %260 = vsyncpa [#allocation4], 1 }
 0x104   :  { %262 = vsyncpa [#allocation4 + $0x1], 1 }
 0x105   :  { %263 = vsyncpa [#allocation5], 1 }
 0x106   :  { %265 = vsyncpa [#allocation5 + $0x1], 1 }

</bundles_post_ra>
